<compile_context>
chip_gen: v7x
topology: tpu7x:2x2x1
jax: 0.10.0
libtpu: 0.0.40
codegen_flags: <defaults>
</compile_context>

<pallas_src>
import functools

import jax
import jax.numpy as jnp
from jax import lax
from jax.experimental import pallas as pl
from jax.experimental.pallas import tpu as pltpu


# ------------------------------ kernel helpers ------------------------------ #
def _shift_flat(v, s):
    """t[:, i] = v[:, i + s] if 0 <= i + s < HW else 0 (zero-fill lane shift)."""
    if s == 0:
        return v
    c, hw = v.shape
    z = jnp.zeros((c, abs(s)), v.dtype)
    if s > 0:
        return jnp.concatenate([v[:, s:], z], axis=1)
    return jnp.concatenate([z, v[:, :hw + s]], axis=1)


def _conv_kxk_nt(v, wg, colmask, *, k, pad, w):
    """k x k 'same' conv of one image, transposed / lane-dense orientation.

    v       : (C, H*W)        f32 input image (flattened spatial, row-major)
    wg      : (k, Cout, k*C)  bf16 weights grouped per dy (row tap)
    colmask : (k, H*W)        f32; colmask[dx] zeroes source columns whose
                              shifted contribution would wrap across a row
    returns : (Cout, H*W)     f32
    """
    c = v.shape[0]
    # Pre-mask per dx (the mask is independent of dy) and cast the MXU
    # operand to bf16 once per dx.
    vm = [(v * colmask[dx:dx + 1, :]).astype(jnp.bfloat16) for dx in range(k)]
    group_by_dy = (k * k * c) >= 128   # deep-K grouping only when it pays on the MXU
    acc = None
    for dy in range(k):                # static unroll over conv taps
        taps = [_shift_flat(vm[dx], (dy - pad) * w + (dx - pad)) for dx in range(k)]
        if group_by_dy:
            part = jnp.dot(wg[dy], jnp.concatenate(taps, axis=0),
                           preferred_element_type=jnp.float32)
            acc = part if acc is None else acc + part
        else:
            for dx in range(k):
                part = jnp.dot(wg[dy, :, dx * c:(dx + 1) * c], taps[dx],
                               preferred_element_type=jnp.float32)
                acc = part if acc is None else acc + part
    return acc


# ------------------------------- Pallas kernel ------------------------------ #
def _residual_kernel(x_ref, w1_ref, w2_ref, *rest, w, k, pad, b_blk,
                     has_skip_conv):
    """Fused residual block for one batch block.

    x_ref : (B_blk, Cin, H*W)   NCHW input, spatial flattened (lane-dense)
    w1_ref: (k, Cout, k*Cin)    conv1 weights grouped per dy, bf16
    w2_ref: (k, Cout, k*Cout)   conv2 weights grouped per dy, bf16
    ws_ref: (Cout, Cin)         1x1 skip-conv weights^T, bf16 (only if needed)
    bn_ref: (Cout, 4|6)         folded BN columns [s1,b1,s2,b2(,ss,bs)]
    m_ref : (k, H*W)            per-dx column masks (row-wrap kill)
    o_ref : (B_blk, Cout, H*W)  NCHW output (lane-dense store)
    """
    if has_skip_conv:
        ws_ref, bn_ref, m_ref, o_ref = rest
    else:
        bn_ref, m_ref, o_ref = rest
        ws_ref = None

    w1 = w1_ref[...]
    w2 = w2_ref[...]
    bn = bn_ref[...]
    cm = m_ref[...]
    ws = ws_ref[...] if has_skip_conv else None

    for b in range(b_blk):                      # static unroll over batch block
        x = x_ref[b].astype(jnp.float32)        # (Cin, H*W)

        # ---- conv1 (3x3) + folded BN1 + ReLU, (Cout, H*W) ---------------- #
        y1 = _conv_kxk_nt(x, w1, cm, k=k, pad=pad, w=w)
        y1 = jnp.maximum(y1 * bn[:, 0:1] + bn[:, 1:2], 0.0)

        # ---- conv2 (3x3) + folded BN2 ------------------------------------ #
        y2 = _conv_kxk_nt(y1, w2, cm, k=k, pad=pad, w=w)
        y2 = y2 * bn[:, 2:3] + bn[:, 3:4]

        # ---- skip branch (1x1 conv + BN, or identity) -------------------- #
        if has_skip_conv:
            sk = jnp.dot(ws, x.astype(jnp.bfloat16),
                         preferred_element_type=jnp.float32)
            sk = sk * bn[:, 4:5] + bn[:, 5:6]
        else:
            sk = x                               # identity skip (Cin == Cout), f32

        # ---- residual add + ReLU, lane-dense (Cout, H*W) store ----------- #
        o_ref[b] = jnp.maximum(y2 + sk, 0.0).astype(o_ref.dtype)


# --------------------------------- wrapper ---------------------------------- #
def residual_forward(x_nchw, p, *, stride=1, k=3):
    """Matches torch `residual.forward` (BN in eval mode). NCHW in / NCHW out."""
    if stride != 1:
        # TODO(synk): strided conv1/skip not implemented in the fused kernel.
        raise NotImplementedError("fused residual kernel supports stride=1 only")
    n, cin, h, w = x_nchw.shape
    cout = p["w1"].shape[-1]
    pad = (k - 1) // 2
    hw = h * w
    has_skip_conv = (cin != cout)

    # Weights grouped per dy and transposed so each conv is
    #   out(Cout, HW) = sum_dy  Wg[dy] (Cout, k*C) @ taps_dy (k*C, HW).
    def group_w(wk):  # (k, k, C, Cout) -> (k, Cout, k*C), bf16 MXU operand
        kk, _, c, co = wk.shape
        return jnp.transpose(wk, (0, 3, 1, 2)).reshape(kk, co, kk * c).astype(jnp.bfloat16)

    w1g = group_w(p["w1"])
    w2g = group_w(p["w2"])

    # Folded BN scale/shift packed column-wise for (Cout, HW)-oriented data.
    cols = [p["s1"], p["b1"], p["s2"], p["b2"]]
    if has_skip_conv:
        cols += [p["ss"], p["bs"]]
    bn = jnp.stack(cols, axis=-1).astype(jnp.float32)             # (Cout, 4|6)

    # colmask[dx] zeroes the SOURCE columns whose shifted contribution would
    # wrap across an image-row boundary of the flat H*W axis:
    #   keep column j  iff  0 <= (j % W) - (dx - pad) < W
    col = jnp.arange(hw, dtype=jnp.int32) % w
    colmask = jnp.stack(
        [((col - (dx - pad) >= 0) & (col - (dx - pad) < w)) for dx in range(k)]
    ).astype(jnp.float32)                                         # (k, HW)

    x_flat = x_nchw.reshape(n, cin, hw)                           # free reshape, stays NCHW

    # Batch block: amortize fixed per-grid-step overhead, but keep >= 2 grid
    # steps when possible so both v7x TensorCores get work.
    bytes_per_img = hw * (4 * cin + 4 * cout                      # x / out blocks
                          + 2 * k * (cin + cout)                  # bf16 masked copies / taps
                          + 4 * (cin + 3 * cout))                 # f32 x / acc / y1 / y2
    b_blk = 1
    for b in range(1, n + 1):
        if n % b:
            continue
        if n // b < min(2, n):
            continue
        if b * bytes_per_img <= (12 << 20):
            b_blk = b
    grid = (n // b_blk,)

    # VMEM budget -> scoped-VMEM limit (review: default 16/32 MiB trips first
    # at real channel counts; v7x physical is 64 MiB, so cap below that).
    fixed_bytes = 2 * (w1g.size * 2 + w2g.size * 2 + bn.size * 4 + colmask.size * 4)
    if has_skip_conv:
        fixed_bytes += 2 * cin * cout * 2
    est = 2 * b_blk * hw * (4 * cin + 4 * cout) + fixed_bytes + b_blk * bytes_per_img
    vmem_limit = int(min(max(est, 32 << 20), 56 << 20))

    inputs = [x_flat, w1g, w2g]
    in_specs = [
        pl.BlockSpec((b_blk, cin, hw), lambda i: (i, 0, 0)),
        pl.BlockSpec((k, cout, k * cin), lambda i: (0, 0, 0)),
        pl.BlockSpec((k, cout, k * cout), lambda i: (0, 0, 0)),
    ]
    if has_skip_conv:
        wst = jnp.transpose(p["ws"].reshape(cin, cout)).astype(jnp.bfloat16)
        inputs.append(wst)
        in_specs.append(pl.BlockSpec((cout, cin), lambda i: (0, 0)))
    inputs += [bn, colmask]
    in_specs += [pl.BlockSpec((cout, bn.shape[-1]), lambda i: (0, 0)),
                 pl.BlockSpec((k, hw), lambda i: (0, 0))]

    kernel = functools.partial(_residual_kernel, w=w, k=k, pad=pad,
                               b_blk=b_blk, has_skip_conv=has_skip_conv)
    out = pl.pallas_call(
        kernel,
        out_shape=jax.ShapeDtypeStruct((n, cout, hw), x_nchw.dtype),
        grid=grid,                                 # one batch block per grid step
        in_specs=in_specs,
        out_specs=pl.BlockSpec((b_blk, cout, hw), lambda i: (i, 0, 0)),
        compiler_params=pltpu.CompilerParams(
            dimension_semantics=("parallel",),
            vmem_limit_bytes=vmem_limit),
    )(*inputs)
    return out.reshape(n, cout, h, w)


# --------------------------- params & reference ----------------------------- #
def init_params(key, cin, cout, eps=1e-5):
    ks = jax.random.split(key, 15)

    def bn(kg, kb, km, kv, c):
        gamma = 1.0 + 0.1 * jax.random.normal(kg, (c,), jnp.float32)
        beta = 0.1 * jax.random.normal(kb, (c,), jnp.float32)
        mean = 0.1 * jax.random.normal(km, (c,), jnp.float32)
        var = jax.random.uniform(kv, (c,), jnp.float32, 0.5, 1.5)
        scale = gamma * lax.rsqrt(var + eps)
        shift = beta - mean * scale
        return scale, shift

    p = {}
    p["w1"] = 0.3 * jax.random.normal(ks[0], (3, 3, cin, cout), jnp.float32)
    p["w2"] = 0.3 * jax.random.normal(ks[1], (3, 3, cout, cout), jnp.float32)
    p["ws"] = 0.3 * jax.random.normal(ks[2], (1, 1, cin, cout), jnp.float32)
    p["s1"], p["b1"] = bn(ks[3], ks[4], ks[5], ks[6], cout)
    p["s2"], p["b2"] = bn(ks[7], ks[8], ks[9], ks[10], cout)
    p["ss"], p["bs"] = bn(ks[11], ks[12], ks[13], ks[14], cout)
    return p


def ref_forward(x_nchw, p, *, stride=1):
    def conv(a, w, s, pad):
        return lax.conv_general_dilated(
            a, w, (s, s), ((pad, pad), (pad, pad)),
            dimension_numbers=("NCHW", "HWIO", "NCHW"))

    def bn(y, s, b):
        return y * s[None, :, None, None] + b[None, :, None, None]

    cin, cout = x_nchw.shape[1], p["w1"].shape[-1]
    y = jnp.maximum(bn(conv(x_nchw, p["w1"], stride, 1), p["s1"], p["b1"]), 0.0)
    y2 = bn(conv(y, p["w2"], 1, 1), p["s2"], p["b2"])
    if stride != 1 or cin != cout:
        skip = bn(conv(x_nchw, p["ws"], stride, 0), p["ss"], p["bs"])
    else:
        skip = x_nchw
    return jnp.maximum(y2 + skip, 0.0)


# ----------------------------------- main ------------------------------------ #
if __name__ == "__main__":
    N, CIN, COUT, H, W = 2, 4, 8, 16, 16     # PyTorch NCHW input: (2, 4, 16, 16)
    key = jax.random.PRNGKey(0)
    kx, kp = jax.random.split(key)
    x = jax.random.normal(kx, (N, CIN, H, W), jnp.float32)
    params = init_params(kp, CIN, COUT)

    out = jax.jit(functools.partial(residual_forward, stride=1))(x, params)
    out = jax.block_until_ready(out)

    ref = ref_forward(x, params, stride=1)
    assert out.shape == (N, COUT, H, W), out.shape
    max_err = float(jnp.max(jnp.abs(out - ref)))
    # bf16 MXU operands with f32 accumulation -> correspondingly looser check.
    assert jnp.allclose(out, ref, rtol=5e-2, atol=5e-2), max_err
    print("KERNEL_OK")
</pallas_src>

<mosaic_0001>
module attributes {stable_mosaic.version = 11 : i64} {
  func.func @_residual_kernel(%arg0: i32, %arg1: memref<1x4x256xf32, #tpu.memory_space<vmem>>, %arg2: memref<3x8x12xbf16, #tpu.memory_space<vmem>>, %arg3: memref<3x8x24xbf16, #tpu.memory_space<vmem>>, %arg4: memref<8x4xbf16, #tpu.memory_space<vmem>>, %arg5: memref<8x6xf32, #tpu.memory_space<vmem>>, %arg6: memref<3x256xf32, #tpu.memory_space<vmem>>, %arg7: memref<1x8x256xf32, #tpu.memory_space<vmem>>) attributes {dimension_semantics = [#tpu.dimension_semantics<parallel>], iteration_bounds = array<i64: 2>, scalar_prefetch = 0 : i64, scratch_operands = 0 : i64, tpu.core_type = #tpu.core_type<tc>, window_params = [{transform_indices = @transform_0, window_bounds = array<i64: 1, 4, 256>}, {pipeline_mode = #tpu.pipeline_mode<synchronous>, transform_indices = @transform_1, window_bounds = array<i64: 3, 8, 12>}, {pipeline_mode = #tpu.pipeline_mode<synchronous>, transform_indices = @transform_2, window_bounds = array<i64: 3, 8, 24>}, {pipeline_mode = #tpu.pipeline_mode<synchronous>, transform_indices = @transform_3, window_bounds = array<i64: 8, 4>}, {pipeline_mode = #tpu.pipeline_mode<synchronous>, transform_indices = @transform_4, window_bounds = array<i64: 8, 6>}, {pipeline_mode = #tpu.pipeline_mode<synchronous>, transform_indices = @transform_5, window_bounds = array<i64: 3, 256>}, {transform_indices = @transform_6, window_bounds = array<i64: 1, 8, 256>}]} {
    %c0 = arith.constant 0 : index
    %c0_0 = arith.constant 0 : index
    %c0_1 = arith.constant 0 : index
    %0 = vector.load %arg2[%c0, %c0_0, %c0_1] : memref<3x8x12xbf16, #tpu.memory_space<vmem>>, vector<3x8x12xbf16>
    %c0_2 = arith.constant 0 : index
    %c0_3 = arith.constant 0 : index
    %c0_4 = arith.constant 0 : index
    %1 = vector.load %arg3[%c0_2, %c0_3, %c0_4] : memref<3x8x24xbf16, #tpu.memory_space<vmem>>, vector<3x8x24xbf16>
    %c0_5 = arith.constant 0 : index
    %c0_6 = arith.constant 0 : index
    %2 = vector.load %arg5[%c0_5, %c0_6] : memref<8x6xf32, #tpu.memory_space<vmem>>, vector<8x6xf32>
    %c0_7 = arith.constant 0 : index
    %c0_8 = arith.constant 0 : index
    %3 = vector.load %arg6[%c0_7, %c0_8] : memref<3x256xf32, #tpu.memory_space<vmem>>, vector<3x256xf32>
    %c0_9 = arith.constant 0 : index
    %c0_10 = arith.constant 0 : index
    %4 = vector.load %arg4[%c0_9, %c0_10] : memref<8x4xbf16, #tpu.memory_space<vmem>>, vector<8x4xbf16>
    %c0_11 = arith.constant 0 : index
    %c0_12 = arith.constant 0 : index
    %c0_13 = arith.constant 0 : index
    %5 = vector.load %arg1[%c0_11, %c0_12, %c0_13] : memref<1x4x256xf32, #tpu.memory_space<vmem>>, vector<1x4x256xf32>
    %6 = vector.shape_cast %5 : vector<1x4x256xf32> to vector<4x256xf32>
    %7 = vector.extract_strided_slice %3 {offsets = [0, 0], sizes = [1, 256], strides = [1, 1]} : vector<3x256xf32> to vector<1x256xf32>
    %8 = vector.broadcast %7 : vector<1x256xf32> to vector<4x256xf32>
    %9 = arith.mulf %6, %8 : vector<4x256xf32>
    %10 = arith.truncf %9 : vector<4x256xf32> to vector<4x256xbf16>
    %11 = vector.extract_strided_slice %3 {offsets = [1, 0], sizes = [1, 256], strides = [1, 1]} : vector<3x256xf32> to vector<1x256xf32>
    %12 = vector.broadcast %11 : vector<1x256xf32> to vector<4x256xf32>
    %13 = arith.mulf %6, %12 : vector<4x256xf32>
    %14 = arith.truncf %13 : vector<4x256xf32> to vector<4x256xbf16>
    %15 = vector.extract_strided_slice %3 {offsets = [2, 0], sizes = [1, 256], strides = [1, 1]} : vector<3x256xf32> to vector<1x256xf32>
    %16 = vector.broadcast %15 : vector<1x256xf32> to vector<4x256xf32>
    %17 = arith.mulf %6, %16 : vector<4x256xf32>
    %18 = arith.truncf %17 : vector<4x256xf32> to vector<4x256xbf16>
    %cst = arith.constant 0.000000e+00 : bf16
    %19 = vector.broadcast %cst : bf16 to vector<4x17xbf16>
    %20 = vector.extract_strided_slice %10 {offsets = [0, 0], sizes = [4, 239], strides = [1, 1]} : vector<4x256xbf16> to vector<4x239xbf16>
    %21 = tpu.concatenate %19, %20 in 1 : vector<4x17xbf16>, vector<4x239xbf16> -> vector<4x256xbf16>
    %cst_14 = arith.constant 0.000000e+00 : bf16
    %22 = vector.broadcast %cst_14 : bf16 to vector<4x16xbf16>
    %23 = vector.extract_strided_slice %14 {offsets = [0, 0], sizes = [4, 240], strides = [1, 1]} : vector<4x256xbf16> to vector<4x240xbf16>
    %24 = tpu.concatenate %22, %23 in 1 : vector<4x16xbf16>, vector<4x240xbf16> -> vector<4x256xbf16>
    %cst_15 = arith.constant 0.000000e+00 : bf16
    %25 = vector.broadcast %cst_15 : bf16 to vector<4x15xbf16>
    %26 = vector.extract_strided_slice %18 {offsets = [0, 0], sizes = [4, 241], strides = [1, 1]} : vector<4x256xbf16> to vector<4x241xbf16>
    %27 = tpu.concatenate %25, %26 in 1 : vector<4x15xbf16>, vector<4x241xbf16> -> vector<4x256xbf16>
    %28 = vector.extract_strided_slice %0 {offsets = [0, 0, 0], sizes = [1, 8, 4], strides = [1, 1, 1]} : vector<3x8x12xbf16> to vector<1x8x4xbf16>
    %29 = vector.shape_cast %28 : vector<1x8x4xbf16> to vector<8x4xbf16>
    %cst_16 = arith.constant dense<0.000000e+00> : vector<8x256xf32>
    %30 = tpu.matmul %29, %21, %cst_16 {dimension_numbers = #tpu.dot_dimension_numbers<[1], [0], [0], [1], [0, 0, 1, 1], [], []>} : vector<8x4xbf16>, vector<4x256xbf16>, vector<8x256xf32> -> vector<8x256xf32>
    %31 = vector.extract_strided_slice %0 {offsets = [0, 0, 4], sizes = [1, 8, 4], strides = [1, 1, 1]} : vector<3x8x12xbf16> to vector<1x8x4xbf16>
    %32 = vector.shape_cast %31 : vector<1x8x4xbf16> to vector<8x4xbf16>
    %cst_17 = arith.constant dense<0.000000e+00> : vector<8x256xf32>
    %33 = tpu.matmul %32, %24, %cst_17 {dimension_numbers = #tpu.dot_dimension_numbers<[1], [0], [0], [1], [0, 0, 1, 1], [], []>} : vector<8x4xbf16>, vector<4x256xbf16>, vector<8x256xf32> -> vector<8x256xf32>
    %34 = arith.addf %30, %33 : vector<8x256xf32>
    %35 = vector.extract_strided_slice %0 {offsets = [0, 0, 8], sizes = [1, 8, 4], strides = [1, 1, 1]} : vector<3x8x12xbf16> to vector<1x8x4xbf16>
    %36 = vector.shape_cast %35 : vector<1x8x4xbf16> to vector<8x4xbf16>
    %cst_18 = arith.constant dense<0.000000e+00> : vector<8x256xf32>
    %37 = tpu.matmul %36, %27, %cst_18 {dimension_numbers = #tpu.dot_dimension_numbers<[1], [0], [0], [1], [0, 0, 1, 1], [], []>} : vector<8x4xbf16>, vector<4x256xbf16>, vector<8x256xf32> -> vector<8x256xf32>
    %38 = arith.addf %34, %37 : vector<8x256xf32>
    %cst_19 = arith.constant 0.000000e+00 : bf16
    %39 = vector.broadcast %cst_19 : bf16 to vector<4x1xbf16>
    %40 = vector.extract_strided_slice %10 {offsets = [0, 0], sizes = [4, 255], strides = [1, 1]} : vector<4x256xbf16> to vector<4x255xbf16>
    %41 = tpu.concatenate %39, %40 in 1 : vector<4x1xbf16>, vector<4x255xbf16> -> vector<4x256xbf16>
    %cst_20 = arith.constant 0.000000e+00 : bf16
    %42 = vector.broadcast %cst_20 : bf16 to vector<4x1xbf16>
    %43 = vector.extract_strided_slice %18 {offsets = [0, 1], sizes = [4, 255], strides = [1, 1]} : vector<4x256xbf16> to vector<4x255xbf16>
    %44 = tpu.concatenate %43, %42 in 1 : vector<4x255xbf16>, vector<4x1xbf16> -> vector<4x256xbf16>
    %45 = vector.extract_strided_slice %0 {offsets = [1, 0, 0], sizes = [1, 8, 4], strides = [1, 1, 1]} : vector<3x8x12xbf16> to vector<1x8x4xbf16>
    %46 = vector.shape_cast %45 : vector<1x8x4xbf16> to vector<8x4xbf16>
    %cst_21 = arith.constant dense<0.000000e+00> : vector<8x256xf32>
    %47 = tpu.matmul %46, %41, %cst_21 {dimension_numbers = #tpu.dot_dimension_numbers<[1], [0], [0], [1], [0, 0, 1, 1], [], []>} : vector<8x4xbf16>, vector<4x256xbf16>, vector<8x256xf32> -> vector<8x256xf32>
    %48 = arith.addf %38, %47 : vector<8x256xf32>
    %49 = vector.extract_strided_slice %0 {offsets = [1, 0, 4], sizes = [1, 8, 4], strides = [1, 1, 1]} : vector<3x8x12xbf16> to vector<1x8x4xbf16>
    %50 = vector.shape_cast %49 : vector<1x8x4xbf16> to vector<8x4xbf16>
    %cst_22 = arith.constant dense<0.000000e+00> : vector<8x256xf32>
    %51 = tpu.matmul %50, %14, %cst_22 {dimension_numbers = #tpu.dot_dimension_numbers<[1], [0], [0], [1], [0, 0, 1, 1], [], []>} : vector<8x4xbf16>, vector<4x256xbf16>, vector<8x256xf32> -> vector<8x256xf32>
    %52 = arith.addf %48, %51 : vector<8x256xf32>
    %53 = vector.extract_strided_slice %0 {offsets = [1, 0, 8], sizes = [1, 8, 4], strides = [1, 1, 1]} : vector<3x8x12xbf16> to vector<1x8x4xbf16>
    %54 = vector.shape_cast %53 : vector<1x8x4xbf16> to vector<8x4xbf16>
    %cst_23 = arith.constant dense<0.000000e+00> : vector<8x256xf32>
    %55 = tpu.matmul %54, %44, %cst_23 {dimension_numbers = #tpu.dot_dimension_numbers<[1], [0], [0], [1], [0, 0, 1, 1], [], []>} : vector<8x4xbf16>, vector<4x256xbf16>, vector<8x256xf32> -> vector<8x256xf32>
    %56 = arith.addf %52, %55 : vector<8x256xf32>
    %cst_24 = arith.constant 0.000000e+00 : bf16
    %57 = vector.broadcast %cst_24 : bf16 to vector<4x15xbf16>
    %58 = vector.extract_strided_slice %10 {offsets = [0, 15], sizes = [4, 241], strides = [1, 1]} : vector<4x256xbf16> to vector<4x241xbf16>
    %59 = tpu.concatenate %58, %57 in 1 : vector<4x241xbf16>, vector<4x15xbf16> -> vector<4x256xbf16>
    %cst_25 = arith.constant 0.000000e+00 : bf16
    %60 = vector.broadcast %cst_25 : bf16 to vector<4x16xbf16>
    %61 = vector.extract_strided_slice %14 {offsets = [0, 16], sizes = [4, 240], strides = [1, 1]} : vector<4x256xbf16> to vector<4x240xbf16>
    %62 = tpu.concatenate %61, %60 in 1 : vector<4x240xbf16>, vector<4x16xbf16> -> vector<4x256xbf16>
    %cst_26 = arith.constant 0.000000e+00 : bf16
    %63 = vector.broadcast %cst_26 : bf16 to vector<4x17xbf16>
    %64 = vector.extract_strided_slice %18 {offsets = [0, 17], sizes = [4, 239], strides = [1, 1]} : vector<4x256xbf16> to vector<4x239xbf16>
    %65 = tpu.concatenate %64, %63 in 1 : vector<4x239xbf16>, vector<4x17xbf16> -> vector<4x256xbf16>
    %66 = vector.extract_strided_slice %0 {offsets = [2, 0, 0], sizes = [1, 8, 4], strides = [1, 1, 1]} : vector<3x8x12xbf16> to vector<1x8x4xbf16>
    %67 = vector.shape_cast %66 : vector<1x8x4xbf16> to vector<8x4xbf16>
    %cst_27 = arith.constant dense<0.000000e+00> : vector<8x256xf32>
    %68 = tpu.matmul %67, %59, %cst_27 {dimension_numbers = #tpu.dot_dimension_numbers<[1], [0], [0], [1], [0, 0, 1, 1], [], []>} : vector<8x4xbf16>, vector<4x256xbf16>, vector<8x256xf32> -> vector<8x256xf32>
    %69 = arith.addf %56, %68 : vector<8x256xf32>
    %70 = vector.extract_strided_slice %0 {offsets = [2, 0, 4], sizes = [1, 8, 4], strides = [1, 1, 1]} : vector<3x8x12xbf16> to vector<1x8x4xbf16>
    %71 = vector.shape_cast %70 : vector<1x8x4xbf16> to vector<8x4xbf16>
    %cst_28 = arith.constant dense<0.000000e+00> : vector<8x256xf32>
    %72 = tpu.matmul %71, %62, %cst_28 {dimension_numbers = #tpu.dot_dimension_numbers<[1], [0], [0], [1], [0, 0, 1, 1], [], []>} : vector<8x4xbf16>, vector<4x256xbf16>, vector<8x256xf32> -> vector<8x256xf32>
    %73 = arith.addf %69, %72 : vector<8x256xf32>
    %74 = vector.extract_strided_slice %0 {offsets = [2, 0, 8], sizes = [1, 8, 4], strides = [1, 1, 1]} : vector<3x8x12xbf16> to vector<1x8x4xbf16>
    %75 = vector.shape_cast %74 : vector<1x8x4xbf16> to vector<8x4xbf16>
    %cst_29 = arith.constant dense<0.000000e+00> : vector<8x256xf32>
    %76 = tpu.matmul %75, %65, %cst_29 {dimension_numbers = #tpu.dot_dimension_numbers<[1], [0], [0], [1], [0, 0, 1, 1], [], []>} : vector<8x4xbf16>, vector<4x256xbf16>, vector<8x256xf32> -> vector<8x256xf32>
    %77 = arith.addf %73, %76 : vector<8x256xf32>
    %78 = vector.extract_strided_slice %2 {offsets = [0, 0], sizes = [8, 1], strides = [1, 1]} : vector<8x6xf32> to vector<8x1xf32>
    %79 = vector.broadcast %78 : vector<8x1xf32> to vector<8x256xf32>
    %80 = arith.mulf %77, %79 : vector<8x256xf32>
    %81 = vector.extract_strided_slice %2 {offsets = [0, 1], sizes = [8, 1], strides = [1, 1]} : vector<8x6xf32> to vector<8x1xf32>
    %82 = vector.broadcast %81 : vector<8x1xf32> to vector<8x256xf32>
    %83 = arith.addf %80, %82 : vector<8x256xf32>
    %cst_30 = arith.constant 0.000000e+00 : f32
    %84 = vector.broadcast %cst_30 : f32 to vector<8x256xf32>
    %85 = arith.maximumf %83, %84 : vector<8x256xf32>
    %86 = vector.extract_strided_slice %3 {offsets = [0, 0], sizes = [1, 256], strides = [1, 1]} : vector<3x256xf32> to vector<1x256xf32>
    %87 = vector.broadcast %86 : vector<1x256xf32> to vector<8x256xf32>
    %88 = arith.mulf %85, %87 : vector<8x256xf32>
    %89 = arith.truncf %88 : vector<8x256xf32> to vector<8x256xbf16>
    %90 = vector.extract_strided_slice %3 {offsets = [1, 0], sizes = [1, 256], strides = [1, 1]} : vector<3x256xf32> to vector<1x256xf32>
    %91 = vector.broadcast %90 : vector<1x256xf32> to vector<8x256xf32>
    %92 = arith.mulf %85, %91 : vector<8x256xf32>
    %93 = arith.truncf %92 : vector<8x256xf32> to vector<8x256xbf16>
    %94 = vector.extract_strided_slice %3 {offsets = [2, 0], sizes = [1, 256], strides = [1, 1]} : vector<3x256xf32> to vector<1x256xf32>
    %95 = vector.broadcast %94 : vector<1x256xf32> to vector<8x256xf32>
    %96 = arith.mulf %85, %95 : vector<8x256xf32>
    %97 = arith.truncf %96 : vector<8x256xf32> to vector<8x256xbf16>
    %cst_31 = arith.constant 0.000000e+00 : bf16
    %98 = vector.broadcast %cst_31 : bf16 to vector<8x17xbf16>
    %99 = vector.extract_strided_slice %89 {offsets = [0, 0], sizes = [8, 239], strides = [1, 1]} : vector<8x256xbf16> to vector<8x239xbf16>
    %100 = tpu.concatenate %98, %99 in 1 : vector<8x17xbf16>, vector<8x239xbf16> -> vector<8x256xbf16>
    %cst_32 = arith.constant 0.000000e+00 : bf16
    %101 = vector.broadcast %cst_32 : bf16 to vector<8x16xbf16>
    %102 = vector.extract_strided_slice %93 {offsets = [0, 0], sizes = [8, 240], strides = [1, 1]} : vector<8x256xbf16> to vector<8x240xbf16>
    %103 = tpu.concatenate %101, %102 in 1 : vector<8x16xbf16>, vector<8x240xbf16> -> vector<8x256xbf16>
    %cst_33 = arith.constant 0.000000e+00 : bf16
    %104 = vector.broadcast %cst_33 : bf16 to vector<8x15xbf16>
    %105 = vector.extract_strided_slice %97 {offsets = [0, 0], sizes = [8, 241], strides = [1, 1]} : vector<8x256xbf16> to vector<8x241xbf16>
    %106 = tpu.concatenate %104, %105 in 1 : vector<8x15xbf16>, vector<8x241xbf16> -> vector<8x256xbf16>
    %107 = vector.extract_strided_slice %1 {offsets = [0, 0, 0], sizes = [1, 8, 8], strides = [1, 1, 1]} : vector<3x8x24xbf16> to vector<1x8x8xbf16>
    %108 = vector.shape_cast %107 : vector<1x8x8xbf16> to vector<8x8xbf16>
    %cst_34 = arith.constant dense<0.000000e+00> : vector<8x256xf32>
    %109 = tpu.matmul %108, %100, %cst_34 {dimension_numbers = #tpu.dot_dimension_numbers<[1], [0], [0], [1], [0, 0, 1, 1], [], []>} : vector<8x8xbf16>, vector<8x256xbf16>, vector<8x256xf32> -> vector<8x256xf32>
    %110 = vector.extract_strided_slice %1 {offsets = [0, 0, 8], sizes = [1, 8, 8], strides = [1, 1, 1]} : vector<3x8x24xbf16> to vector<1x8x8xbf16>
    %111 = vector.shape_cast %110 : vector<1x8x8xbf16> to vector<8x8xbf16>
    %cst_35 = arith.constant dense<0.000000e+00> : vector<8x256xf32>
    %112 = tpu.matmul %111, %103, %cst_35 {dimension_numbers = #tpu.dot_dimension_numbers<[1], [0], [0], [1], [0, 0, 1, 1], [], []>} : vector<8x8xbf16>, vector<8x256xbf16>, vector<8x256xf32> -> vector<8x256xf32>
    %113 = arith.addf %109, %112 : vector<8x256xf32>
    %114 = vector.extract_strided_slice %1 {offsets = [0, 0, 16], sizes = [1, 8, 8], strides = [1, 1, 1]} : vector<3x8x24xbf16> to vector<1x8x8xbf16>
    %115 = vector.shape_cast %114 : vector<1x8x8xbf16> to vector<8x8xbf16>
    %cst_36 = arith.constant dense<0.000000e+00> : vector<8x256xf32>
    %116 = tpu.matmul %115, %106, %cst_36 {dimension_numbers = #tpu.dot_dimension_numbers<[1], [0], [0], [1], [0, 0, 1, 1], [], []>} : vector<8x8xbf16>, vector<8x256xbf16>, vector<8x256xf32> -> vector<8x256xf32>
    %117 = arith.addf %113, %116 : vector<8x256xf32>
    %cst_37 = arith.constant 0.000000e+00 : bf16
    %118 = vector.broadcast %cst_37 : bf16 to vector<8x1xbf16>
    %119 = vector.extract_strided_slice %89 {offsets = [0, 0], sizes = [8, 255], strides = [1, 1]} : vector<8x256xbf16> to vector<8x255xbf16>
    %120 = tpu.concatenate %118, %119 in 1 : vector<8x1xbf16>, vector<8x255xbf16> -> vector<8x256xbf16>
    %cst_38 = arith.constant 0.000000e+00 : bf16
    %121 = vector.broadcast %cst_38 : bf16 to vector<8x1xbf16>
    %122 = vector.extract_strided_slice %97 {offsets = [0, 1], sizes = [8, 255], strides = [1, 1]} : vector<8x256xbf16> to vector<8x255xbf16>
    %123 = tpu.concatenate %122, %121 in 1 : vector<8x255xbf16>, vector<8x1xbf16> -> vector<8x256xbf16>
    %124 = vector.extract_strided_slice %1 {offsets = [1, 0, 0], sizes = [1, 8, 8], strides = [1, 1, 1]} : vector<3x8x24xbf16> to vector<1x8x8xbf16>
    %125 = vector.shape_cast %124 : vector<1x8x8xbf16> to vector<8x8xbf16>
    %cst_39 = arith.constant dense<0.000000e+00> : vector<8x256xf32>
    %126 = tpu.matmul %125, %120, %cst_39 {dimension_numbers = #tpu.dot_dimension_numbers<[1], [0], [0], [1], [0, 0, 1, 1], [], []>} : vector<8x8xbf16>, vector<8x256xbf16>, vector<8x256xf32> -> vector<8x256xf32>
    %127 = arith.addf %117, %126 : vector<8x256xf32>
    %128 = vector.extract_strided_slice %1 {offsets = [1, 0, 8], sizes = [1, 8, 8], strides = [1, 1, 1]} : vector<3x8x24xbf16> to vector<1x8x8xbf16>
    %129 = vector.shape_cast %128 : vector<1x8x8xbf16> to vector<8x8xbf16>
    %cst_40 = arith.constant dense<0.000000e+00> : vector<8x256xf32>
    %130 = tpu.matmul %129, %93, %cst_40 {dimension_numbers = #tpu.dot_dimension_numbers<[1], [0], [0], [1], [0, 0, 1, 1], [], []>} : vector<8x8xbf16>, vector<8x256xbf16>, vector<8x256xf32> -> vector<8x256xf32>
    %131 = arith.addf %127, %130 : vector<8x256xf32>
    %132 = vector.extract_strided_slice %1 {offsets = [1, 0, 16], sizes = [1, 8, 8], strides = [1, 1, 1]} : vector<3x8x24xbf16> to vector<1x8x8xbf16>
    %133 = vector.shape_cast %132 : vector<1x8x8xbf16> to vector<8x8xbf16>
    %cst_41 = arith.constant dense<0.000000e+00> : vector<8x256xf32>
    %134 = tpu.matmul %133, %123, %cst_41 {dimension_numbers = #tpu.dot_dimension_numbers<[1], [0], [0], [1], [0, 0, 1, 1], [], []>} : vector<8x8xbf16>, vector<8x256xbf16>, vector<8x256xf32> -> vector<8x256xf32>
    %135 = arith.addf %131, %134 : vector<8x256xf32>
    %cst_42 = arith.constant 0.000000e+00 : bf16
    %136 = vector.broadcast %cst_42 : bf16 to vector<8x15xbf16>
    %137 = vector.extract_strided_slice %89 {offsets = [0, 15], sizes = [8, 241], strides = [1, 1]} : vector<8x256xbf16> to vector<8x241xbf16>
    %138 = tpu.concatenate %137, %136 in 1 : vector<8x241xbf16>, vector<8x15xbf16> -> vector<8x256xbf16>
    %cst_43 = arith.constant 0.000000e+00 : bf16
    %139 = vector.broadcast %cst_43 : bf16 to vector<8x16xbf16>
    %140 = vector.extract_strided_slice %93 {offsets = [0, 16], sizes = [8, 240], strides = [1, 1]} : vector<8x256xbf16> to vector<8x240xbf16>
    %141 = tpu.concatenate %140, %139 in 1 : vector<8x240xbf16>, vector<8x16xbf16> -> vector<8x256xbf16>
    %cst_44 = arith.constant 0.000000e+00 : bf16
    %142 = vector.broadcast %cst_44 : bf16 to vector<8x17xbf16>
    %143 = vector.extract_strided_slice %97 {offsets = [0, 17], sizes = [8, 239], strides = [1, 1]} : vector<8x256xbf16> to vector<8x239xbf16>
    %144 = tpu.concatenate %143, %142 in 1 : vector<8x239xbf16>, vector<8x17xbf16> -> vector<8x256xbf16>
    %145 = vector.extract_strided_slice %1 {offsets = [2, 0, 0], sizes = [1, 8, 8], strides = [1, 1, 1]} : vector<3x8x24xbf16> to vector<1x8x8xbf16>
    %146 = vector.shape_cast %145 : vector<1x8x8xbf16> to vector<8x8xbf16>
    %cst_45 = arith.constant dense<0.000000e+00> : vector<8x256xf32>
    %147 = tpu.matmul %146, %138, %cst_45 {dimension_numbers = #tpu.dot_dimension_numbers<[1], [0], [0], [1], [0, 0, 1, 1], [], []>} : vector<8x8xbf16>, vector<8x256xbf16>, vector<8x256xf32> -> vector<8x256xf32>
    %148 = arith.addf %135, %147 : vector<8x256xf32>
    %149 = vector.extract_strided_slice %1 {offsets = [2, 0, 8], sizes = [1, 8, 8], strides = [1, 1, 1]} : vector<3x8x24xbf16> to vector<1x8x8xbf16>
    %150 = vector.shape_cast %149 : vector<1x8x8xbf16> to vector<8x8xbf16>
    %cst_46 = arith.constant dense<0.000000e+00> : vector<8x256xf32>
    %151 = tpu.matmul %150, %141, %cst_46 {dimension_numbers = #tpu.dot_dimension_numbers<[1], [0], [0], [1], [0, 0, 1, 1], [], []>} : vector<8x8xbf16>, vector<8x256xbf16>, vector<8x256xf32> -> vector<8x256xf32>
    %152 = arith.addf %148, %151 : vector<8x256xf32>
    %153 = vector.extract_strided_slice %1 {offsets = [2, 0, 16], sizes = [1, 8, 8], strides = [1, 1, 1]} : vector<3x8x24xbf16> to vector<1x8x8xbf16>
    %154 = vector.shape_cast %153 : vector<1x8x8xbf16> to vector<8x8xbf16>
    %cst_47 = arith.constant dense<0.000000e+00> : vector<8x256xf32>
    %155 = tpu.matmul %154, %144, %cst_47 {dimension_numbers = #tpu.dot_dimension_numbers<[1], [0], [0], [1], [0, 0, 1, 1], [], []>} : vector<8x8xbf16>, vector<8x256xbf16>, vector<8x256xf32> -> vector<8x256xf32>
    %156 = arith.addf %152, %155 : vector<8x256xf32>
    %157 = vector.extract_strided_slice %2 {offsets = [0, 2], sizes = [8, 1], strides = [1, 1]} : vector<8x6xf32> to vector<8x1xf32>
    %158 = vector.broadcast %157 : vector<8x1xf32> to vector<8x256xf32>
    %159 = arith.mulf %156, %158 : vector<8x256xf32>
    %160 = vector.extract_strided_slice %2 {offsets = [0, 3], sizes = [8, 1], strides = [1, 1]} : vector<8x6xf32> to vector<8x1xf32>
    %161 = vector.broadcast %160 : vector<8x1xf32> to vector<8x256xf32>
    %162 = arith.addf %159, %161 : vector<8x256xf32>
    %163 = arith.truncf %6 : vector<4x256xf32> to vector<4x256xbf16>
    %cst_48 = arith.constant dense<0.000000e+00> : vector<8x256xf32>
    %164 = tpu.matmul %4, %163, %cst_48 {dimension_numbers = #tpu.dot_dimension_numbers<[1], [0], [0], [1], [0, 0, 1, 1], [], []>} : vector<8x4xbf16>, vector<4x256xbf16>, vector<8x256xf32> -> vector<8x256xf32>
    %165 = vector.extract_strided_slice %2 {offsets = [0, 4], sizes = [8, 1], strides = [1, 1]} : vector<8x6xf32> to vector<8x1xf32>
    %166 = vector.broadcast %165 : vector<8x1xf32> to vector<8x256xf32>
    %167 = arith.mulf %164, %166 : vector<8x256xf32>
    %168 = vector.extract_strided_slice %2 {offsets = [0, 5], sizes = [8, 1], strides = [1, 1]} : vector<8x6xf32> to vector<8x1xf32>
    %169 = vector.broadcast %168 : vector<8x1xf32> to vector<8x256xf32>
    %170 = arith.addf %167, %169 : vector<8x256xf32>
    %171 = arith.addf %162, %170 : vector<8x256xf32>
    %cst_49 = arith.constant 0.000000e+00 : f32
    %172 = vector.broadcast %cst_49 : f32 to vector<8x256xf32>
    %173 = arith.maximumf %171, %172 : vector<8x256xf32>
    %c0_50 = arith.constant 0 : index
    %c0_51 = arith.constant 0 : index
    %c0_52 = arith.constant 0 : index
    %174 = vector.load %arg7[%c0_50, %c0_51, %c0_52] : memref<1x8x256xf32, #tpu.memory_space<vmem>>, vector<1x8x256xf32>
    %175 = vector.shape_cast %174 : vector<1x8x256xf32> to vector<8x256xf32>
    %176 = vector.shape_cast %173 : vector<8x256xf32> to vector<1x8x256xf32>
    tpu.vector_store %arg7[%c0_50, %c0_51, %c0_52], %176 {strides = array<i32>} : memref<1x8x256xf32, #tpu.memory_space<vmem>>, vector<1x8x256xf32>,
    return
  }
  func.func @transform_0(%arg0: i32) -> (i32, i32, i32) {
    %c0_i32 = arith.constant 0 : i32
    %c0_i32_0 = arith.constant 0 : i32
    %c0_i32_1 = arith.constant 0 : i32
    return %arg0, %c0_i32, %c0_i32_0 : i32, i32, i32
  }
  func.func @transform_1(%arg0: i32) -> (i32, i32, i32) {
    %c0_i32 = arith.constant 0 : i32
    %c0_i32_0 = arith.constant 0 : i32
    %c0_i32_1 = arith.constant 0 : i32
    %c0_i32_2 = arith.constant 0 : i32
    return %c0_i32, %c0_i32_0, %c0_i32_1 : i32, i32, i32
  }
  func.func @transform_2(%arg0: i32) -> (i32, i32, i32) {
    %c0_i32 = arith.constant 0 : i32
    %c0_i32_0 = arith.constant 0 : i32
    %c0_i32_1 = arith.constant 0 : i32
    %c0_i32_2 = arith.constant 0 : i32
    return %c0_i32, %c0_i32_0, %c0_i32_1 : i32, i32, i32
  }
  func.func @transform_3(%arg0: i32) -> (i32, i32) {
    %c0_i32 = arith.constant 0 : i32
    %c0_i32_0 = arith.constant 0 : i32
    %c0_i32_1 = arith.constant 0 : i32
    return %c0_i32, %c0_i32_0 : i32, i32
  }
  func.func @transform_4(%arg0: i32) -> (i32, i32) {
    %c0_i32 = arith.constant 0 : i32
    %c0_i32_0 = arith.constant 0 : i32
    %c0_i32_1 = arith.constant 0 : i32
    return %c0_i32, %c0_i32_0 : i32, i32
  }
  func.func @transform_5(%arg0: i32) -> (i32, i32) {
    %c0_i32 = arith.constant 0 : i32
    %c0_i32_0 = arith.constant 0 : i32
    %c0_i32_1 = arith.constant 0 : i32
    return %c0_i32, %c0_i32_0 : i32, i32
  }
  func.func @transform_6(%arg0: i32) -> (i32, i32, i32) {
    %c0_i32 = arith.constant 0 : i32
    %c0_i32_0 = arith.constant 0 : i32
    %c0_i32_1 = arith.constant 0 : i32
    return %arg0, %c0_i32, %c0_i32_0 : i32, i32, i32
  }
}

</mosaic_0001>

<bundles_post_ra>
// kernel: residual_forward.1
= control target key start
LH: loop header
LB: loop body
LE: loop exit
PB: predicated region body
PF: predicated region fallthrough
CT: control target
= control target key end

     0   :  { %s1832_s21 = smov 0   ;;  %s2124_s0 = inlined_call_operand.vmem [shape: f32[2,4,256], index: 0, kind: input, shape index: {}]   ;;  %s2125_s1 = inlined_call_operand.vmem [shape: bf16[3,8,12], index: 1, kind: input, shape index: {}]   ;;  %s2126_s2 = inlined_call_operand.vmem [shape: bf16[3,8,24], index: 2, kind: input, shape index: {}]   ;;  %s2127_s3 = inlined_call_operand.vmem [shape: bf16[8,4], index: 3, kind: input, shape index: {}]   ;;  %s2128_s4 = inlined_call_operand.vmem [shape: f32[8,6], index: 4, kind: input, shape index: {}]   ;;  %s2129_s5 = inlined_call_operand.vmem [shape: f32[3,256], index: 5, kind: input, shape index: {}]   ;;  %s2130_s6 = inlined_call_operand.vmem [shape: f32[2,8,256], index: 6, kind: output, shape index: {}]  }
   0x1 LB: > { %s1614_s22 = sadd.s32 4294967295, %s1779_s21   ;;  %p1618_p0 = scmp.ge.s32.totalorder %s1779_s21, 1  ;;  %s1779_s21 = sphi %s1832_s21, %s16_s21  }
   0x2   : > { %p212_p1 = scmp.lt.s32.totalorder %s1779_s21, 3 }
   0x4   : > { %p213_p2 = pnand %p1618_p0, %p212_p1 }
   0x5   : > { %p242_p3 = scmp.lt.s32.totalorder (!%p213_p2), %s1614_s22, 1  ;;  %v264_v0 = vlaneseq (!%p213_p2)  ;;  %v1843_v1 = vld [vmem:[%s2125_s1] sm:$0xf] (!%p213_p2)  ;;  %s1781_s27 = smov (!%p213_p2), 124   ;;  %v1782_v26 = vmov (!%p213_p2), 0   ;;  %v1792_v45 = vmov (!%p213_p2), 1  }
   0x6   : > { %216 = sbr.rel (%p213_p2) target bundleno = 902 (0x386), region = 44  ;;  %v1623_v2 = vcombine.low (!%p213_p2), %v1843_v1, %v1843_v1  ;;  %v260_v4 = vld [vmem:[%s2129_s5] sm:$0x77] (!%p213_p2)  ;;  %429 = vmatprep.mubr.bf16.mxu0 (!%p213_p2), %v1782_v26  ;;  %1759 = vset.pattern.permute.xlu0 (!%p213_p2), %v1782_v26  ;;  %s1783_s8 = smov (!%p213_p2), 16   ;;  %v1916_v42 = vld [vmem:[%s2125_s1 + $0x8] sm:$0xf] (!%p213_p2) }
   0x7   : > { %v265_v3 = vshrl.u32 (!%p213_p2), %v264_v0, 7  ;;  %1007 = vmatprep.mubr.bf16.mxu1 (!%p213_p2), %v1782_v26  ;;  %s1784_s9 = smov (!%p213_p2), 17   ;;  %s1785_s10 = smov (!%p213_p2), 15   ;;  %v1900_v40 = vld [vmem:[%s2125_s1 + $0x4] sm:$0xf] (!%p213_p2)  ;;  %v1639_v43 = vcombine.low (!%p213_p2), %v1916_v42, %v1916_v42  ;;  %1760 = vset.pattern.permute.xlu1 (!%p213_p2), %v1792_v45  ;;  %vm366_vm0 = vcmask (!%p213_p2), 130048  }
   0x8   : > { %385 = vrot.lane.b32.xlu1 (!%p213_p2), %v1623_v2, %s1781_s27  ;;  %s1786_s11 = smov (!%p213_p2), 120   ;;  %s1787_s12 = smov (!%p213_p2), 1   ;;  %v1632_v41 = vcombine.low (!%p213_p2), %v1900_v40, %v1900_v40  ;;  %v1929_v44 = vld [vmem:[%s2128_s4] sm:$0xff] (!%p213_p2)  ;;  %vm354_vm1 = vcmask (!%p213_p2), 138240   ;;  %vm391_vm2 = vcmask (!%p213_p2), 1041408   ;;  %vm387_vm3 = vcmask (!%p213_p2), 31744  }
   0x9   : > { %v294_v5 = vsub.s32 (!%p213_p2), 1, %v265_v3  ;;  %v298_v6 = vsub.s32 (!%p213_p2), 5, %v265_v3  ;;  %v266_v7 = vsub.s32 (!%p213_p2), 0, %v265_v3  ;;  %v270_v8 = vsub.s32 (!%p213_p2), 4, %v265_v3  ;;  %s1788_s15 = smov (!%p213_p2), 127   ;;  %s1789_s16 = smov (!%p213_p2), 113  }
   0xa   : > { %v322_v9 = vsub.s32 (!%p213_p2), 2, %v265_v3  ;;  %v326_v10 = vsub.s32 (!%p213_p2), 6, %v265_v3  ;;  %s1790_s17 = smov (!%p213_p2), 112   ;;  %s1791_s20 = smov (!%p213_p2), 111   ;;  %vm377_vm4 = vcmask (!%p213_p2), 121856   ;;  %vm544_vm5 = vcmask (!%p213_p2), 7168  }
   0xb   : > { %v295_v11 = vrot.slane (!%p213_p2), %v260_v4, %v294_v5  ;;  %v299_v12 = vrot.slane (!%p213_p2), %v260_v4, %v298_v6  ;;  %v267_v13 = vrot.slane (!%p213_p2), %v260_v4, %v266_v7  ;;  %v271_v14 = vrot.slane (!%p213_p2), %v260_v4, %v270_v8 }
   0xc   : > { %v323_v15 = vrot.slane (!%p213_p2), %v260_v4, %v322_v9  ;;  %v327_v16 = vrot.slane (!%p213_p2), %v260_v4, %v326_v10  ;;  %vm553_vm6 = vcmask (!%p213_p2), 1039360   ;;  %vm723_vm7 = vcmask (!%p213_p2), 924672  }
   0xd   : > { %s2132_s22 = smov (!%p242_p3, %s1614_s22), 1  ;;  %v1857_v17 = vrot.slane %v295_v11, %v294_v5  ;;  %v1859_v18 = vrot.slane %v299_v12, %v294_v5  ;;  %v1861_v19 = vrot.slane %v267_v13, %v266_v7  ;;  %v1863_v20 = vrot.slane %v271_v14, %v266_v7 }
   0xe   : > { %s1669_s28 = sshll.u32 %s2132_s22, 3  ;;  %v1867_v22 = vrot.slane %v323_v15, %v322_v9  ;;  %v1869_v23 = vrot.slane %v327_v16, %v322_v9  ;;  %vm732_vm8 = vcmask 916480   ;;  %vm741_vm9 = vcmask 908288  }
   0xf   : > { %s246_s7 = scalar_lea.vmem %s2124_s0, %s1669_s28  ;;  %v312_v24 = vcombine.low %v1857_v17, %v1859_v18  ;;  %v284_v25 = vcombine.low %v1861_v19, %v1863_v20  ;;  %vm969_vm10 = vcmask 1043456   ;;  %vm965_vm11 = vcmask 64512  }
  0x10   : > { %v1865_v21 = vld [vmem:[%s246_s7] sm:$0xff]  ;;  %v340_v27 = vcombine.low %v1867_v22, %v1869_v23 }
  0x11   : > { %v314_v28 = vmul.f32 %v312_v24, %v1865_v21  ;;  %v286_v29 = vmul.f32 %v284_v25, %v1865_v21 }
  0x12   : > { %v342_v33 = vmul.f32 %v340_v27, %v1865_v21 }
  0x13   : > { %v1882_v30 = vpack.c.bf16 %v314_v28, %v314_v28  ;;  %v316_v31 = vcombine.high %v314_v28, %v314_v28  ;;  %v290_v32 = vpack.c.bf16 %v286_v29, %v286_v29  ;;  %v288_v35 = vcombine.high %v286_v29, %v286_v29 }
  0x14   : > { %v346_v36 = vpack.c.bf16 %v342_v33, %v342_v33  ;;  %v344_v38 = vcombine.high %v342_v33, %v342_v33 }
  0x15   : > { %362 = vrot.lane.b32.xlu0 %v1882_v30, %s1783_s8  ;;  %v1887_v34 = vpack.c.bf16 %v316_v31, %v316_v31  ;;  %350 = vrot.lane.b32.xlu1 %v290_v32, %s1784_s9  ;;  %v291_v37 = vpack.c.bf16 %v288_v35, %v288_v35  ;;  %v618_v6 = vsel %vm391_vm2, %v1882_v30, 0 }
  0x16   : > { %v347_v39 = vpack.c.bf16 %v344_v38, %v344_v38 }
  0x19   : > { %364 = vrot.lane.b32.xlu0 %v1887_v34, %s1783_s8  ;;  %373 = vrot.lane.b32.xlu1 %v346_v36, %s1785_s10 }
  0x1d   : > { %352 = vrot.lane.b32.xlu0 %v291_v37, %s1784_s9  ;;  %487 = vrot.lane.b32.xlu1 %v1623_v2, %s1786_s11 }
  0x21   : > { %375 = vrot.lane.b32.xlu0 %v347_v39, %s1785_s10  ;;  %542 = vrot.lane.b32.xlu1 %v291_v37, %s1787_s12 }
  0x25   : > { %540 = vrot.lane.b32.xlu0 %v290_v32, %s1787_s12  ;;  %549 = vrot.lane.b32.xlu1 %v346_v36, %s1788_s15 }
  0x29   : > { %612 = vrot.lane.b32.xlu0 %v1632_v41, %s1781_s27  ;;  %666 = vrot.lane.b32.xlu1 %v1632_v41, %s1786_s11 }
  0x2d   : > { %551 = vrot.lane.b32.xlu0 %v347_v39, %s1788_s15  ;;  %721 = vrot.lane.b32.xlu1 %v291_v37, %s1789_s16 }
  0x31   : > { %719 = vrot.lane.b32.xlu0 %v290_v32, %s1789_s16  ;;  %730 = vrot.lane.b32.xlu1 %v1887_v34, %s1790_s17 }
  0x35   : > { %728 = vrot.lane.b32.xlu0 %v1882_v30, %s1790_s17  ;;  %737 = vrot.lane.b32.xlu1 %v346_v36, %s1791_s20 }
  0x39   : > { %800 = vrot.lane.b32.xlu0 %v1639_v43, %s1781_s27  ;;  %853 = vrot.lane.b32.xlu1 %v1639_v43, %s1786_s11 }
  0x3d   : > { %739 = vrot.lane.b32.xlu0 %v347_v39, %s1791_s20  ;;  %914 = vperm.xlu1 %1760, %v1929_v44  }
  0x41   : > { %908 = vperm.xlu0 %1759, %v1929_v44  }
  0x7a   : > { %v386_v46 = vpop.permute.xlu1 %385 }
  0x87   : > { %v363_v47 = vpop.permute.xlu0 %362  ;;  %v351_v48 = vpop.permute.xlu1 %350 }
  0x88   : > { %v370_v49 = vsel %vm366_vm0, 0, %v363_v47  ;;  %v359_v52 = vsel %vm354_vm1, 0, %v351_v48 }
  0x89   : > { %v392_v53 = vsel %vm391_vm2, %v370_v49, 0  ;;  %v441_v54 = vsel %vm391_vm2, %v359_v52, 0  ;;  %v1995_v52 = vld [vmem:[%s2126_s2] sm:$0xf] }
  0x8b   : > { %v365_v50 = vpop.permute.xlu0 %364  ;;  %v374_v56 = vpop.permute.xlu1 %373 }
  0x8c   : > { %v367_v51 = vsel %vm366_vm0, %v363_v47, %v365_v50  ;;  %v381_v61 = vsel %vm377_vm4, 0, %v374_v56 }
  0x8d   : > { %1624 = vmatprep.subr.msk.bf16.mxu0 %vm391_vm2, %v367_v51  ;;  %v492_v0 = vsel %vm391_vm2, %v381_v61, 0 }
  0x8e   : > { %398 = vmatpush1.bf16.msra.mxu0 %v392_v53 }
  0x8f   : > { %v353_v55 = vpop.permute.xlu0 %352  ;;  %v488_v60 = vpop.permute.xlu1 %487 }
  0x90   : > { %v355_v57 = vsel %vm354_vm1, %v351_v48, %v353_v55 }
  0x91   : > { %1625 = vmatmul.mubr.msk.bf16.vlgmr.msra.gmra.mrb[0].mxu0 %vm387_vm3, %v386_v46  ;;  %1626 = vmatprep.subr.msk.bf16.mxu0 %vm391_vm2, %v355_v57 }
  0x92   : > { %447 = vmatpush1.bf16.msra.mxu0 %v441_v54  ;;  %478 = vmatprep.mubr.bf16.mxu0 %v1782_v26 }
  0x93   : > { %v376_v58 = vpop.permute.xlu0 %375  ;;  %v543_v62 = vpop.permute.xlu1 %542 }
  0x94   : > { %v378_v59 = vsel %vm377_vm4, %v374_v56, %v376_v58  ;;  %v1644_v56 = vcombine.low %v1995_v52, %v1995_v52 }
  0x95   : > { %1628 = vmatprep.subr.msk.bf16.mxu0 %vm391_vm2, %v378_v59 }
  0x97   : > { %v541_v63 = vpop.permute.xlu0 %540  ;;  %v550_v7 = vpop.permute.xlu1 %549 }
  0x98   : > { %v545_v2 = vsel %vm544_vm5, %v541_v63, %v543_v62  ;;  %v548_v3 = vsel %vm544_vm5, 0, %v541_v63  ;;  %v1487_v62 = vcombine.high %v1865_v21, %v1865_v21  ;;  %v1489_v63 = vpack.c.bf16 %v1865_v21, %v1865_v21 }
  0x99   : > { %v561_v4 = vsel %vm391_vm2, %v548_v3, 0  ;;  %v261_v3 = vld [vmem:[%s2127_s3] sm:$0xf]  ;;  %v1795_v21 = vmov 3  }
  0x9b   : > { %v613_v5 = vpop.permute.xlu0 %612  ;;  %v667_v9 = vpop.permute.xlu1 %666 }
  0x9d   : > { %1627 = vmatmul.mubr.msk.bf16.vlgmr.msra.gmra.mrb[0].mxu0 %vm387_vm3, %v1843_v1 }
  0x9e   : > { %498 = vmatpush1.bf16.msra.mxu0 %v492_v0  ;;  %529 = vmatprep.mubr.bf16.mxu0 %v1782_v26  ;;  %v1490_v0 = vpack.c.bf16 %v1487_v62, %v1487_v62 }
  0x9f   : > { %1630 = vmatprep.subr.msk.bf16.mxu0 %vm391_vm2, %v545_v2  ;;  %v552_v1 = vpop.permute.xlu0 %551  ;;  %v722_v11 = vpop.permute.xlu1 %721  ;;  %v1495_v2 = vsel %vm391_vm2, %v1489_v63, 0 }
  0xa0   : > { %v557_v8 = vsel %vm553_vm6, %v552_v1, 0  ;;  %v554_v10 = vsel %vm553_vm6, %v550_v7, %v552_v1  ;;  %v727_v13 = vsel %vm723_vm7, %v722_v11, 0  ;;  %v1796_v1 = vmov 5  }
  0xa1   : > { %v672_v12 = vsel %vm391_vm2, %v554_v10, 0 }
  0xa3   : > { %v720_v14 = vpop.permute.xlu0 %719  ;;  %v731_v16 = vpop.permute.xlu1 %730 }
  0xa4   : > { %v724_v15 = vsel %vm723_vm7, %v720_v14, %v722_v11  ;;  %v736_v27 = vsel %vm732_vm8, %v731_v16, 0 }
  0xa5   : > { %v750_v24 = vsel %vm391_vm2, %v724_v15, 0 }
  0xa7   : > { %v729_v25 = vpop.permute.xlu0 %728  ;;  %v738_v33 = vpop.permute.xlu1 %737 }
  0xa8   : > { %v733_v29 = vsel %vm732_vm8, %v729_v25, %v731_v16 }
  0xa9   : > { %1629 = vmatmul.mubr.msk.bf16.vlgmr.msra.gmra.mrb[0].mxu0 %vm387_vm3, %v488_v60  ;;  %v806_v31 = vsel %vm391_vm2, %v733_v29, 0 }
  0xaa   : > { %567 = vmatpush1.bf16.msra.mxu0 %v561_v4  ;;  %598 = vmatprep.mubr.bf16.mxu0 %v1782_v26  ;;  %v1793_v4 = vmov 2  }
  0xab   : > { %1633 = vmatprep.subr.msk.bf16.mxu0 %vm391_vm2, %v1887_v34  ;;  %v801_v28 = vpop.permute.xlu0 %800  ;;  %v854_v36 = vpop.permute.xlu1 %853  ;;  %1761 = vset.pattern.permute.xlu1 %v1793_v4 }
  0xaf   : > { %v740_v30 = vpop.permute.xlu0 %739 }
  0xb0   : > { %v745_v32 = vsel %vm741_vm9, %v740_v30, 0  ;;  %v742_v34 = vsel %vm741_vm9, %v738_v33, %v740_v30 }
  0xb1   : > { %v859_v35 = vsel %vm391_vm2, %v742_v34, 0 }
  0xb5   : > { %1631 = vmatmul.mubr.msk.bf16.vlgmr.msra.gmra.mrb[0].mxu0 %vm387_vm3, %v1900_v40 }
  0xb6   : > { %624 = vmatpush1.bf16.msra.mxu0 %v618_v6  ;;  %655 = vmatprep.mubr.bf16.mxu0 %v1782_v26 }
  0xb7   : > { %1635 = vmatprep.subr.msk.bf16.mxu0 %vm391_vm2, %v557_v8 }
  0xbc   : > { %v915_v39 = vpop.permute.xlu1 %914 }
  0xc0   : > { %v909_v37 = vpop.permute.xlu0 %908 }
  0xc1   : > { %1634 = vmatmul.mubr.msk.bf16.vlgmr.msra.gmra.mrb[0].mxu0 %vm387_vm3, %v613_v5  ;;  %v1794_v5 = vmov 4  }
  0xc2   : > { %677 = vmatpush1.bf16.msra.mxu0 %v672_v12  ;;  %708 = vmatprep.mubr.bf16.mxu0 %v1782_v26 }
  0xc3   : > { %1637 = vmatprep.subr.msk.bf16.mxu0 %vm391_vm2, %v727_v13  ;;  %1762 = vset.pattern.permute.xlu0 %v1794_v5 }
  0xcd   : > { %1636 = vmatmul.mubr.msk.bf16.vlgmr.msra.gmra.mrb[0].mxu0 %vm387_vm3, %v667_v9 }
  0xce   : > { %755 = vmatpush1.bf16.msra.mxu0 %v750_v24  ;;  %786 = vmatprep.mubr.bf16.mxu0 %v1782_v26 }
  0xcf   : > { %1640 = vmatprep.subr.msk.bf16.mxu0 %vm391_vm2, %v736_v27 }
  0xd9   : > { %1638 = vmatmul.mubr.msk.bf16.vlgmr.msra.gmra.mrb[0].mxu0 %vm387_vm3, %v1916_v42 }
  0xda   : > { %811 = vmatpush1.bf16.msra.mxu0 %v806_v31  ;;  %842 = vmatprep.mubr.bf16.mxu0 %v1782_v26 }
  0xdb   : > { %1642 = vmatprep.subr.msk.bf16.mxu0 %vm391_vm2, %v745_v32 }
  0xe5   : > { %1641 = vmatmul.mubr.msk.bf16.vlgmr.msra.gmra.mrb[0].mxu0 %vm387_vm3, %v801_v28 }
  0xe6   : > { %864 = vmatpush1.bf16.msra.mxu0 %v859_v35  ;;  %895 = vmatprep.mubr.bf16.mxu0 %v1782_v26 }
  0xe7   : > { %1665 = vmatprep.subr.msk.bf16.mxu0 %vm391_vm2, %v1490_v0 }
  0xf1   : > { %1643 = vmatmul.mubr.msk.bf16.vlgmr.msra.gmra.mrb[0].mxu0 %vm387_vm3, %v854_v36 }
  0xf2   : > { %1532 = vmatprep.mubr.bf16.mxu0 %v1782_v26  ;;  %1501 = vmatpush1.bf16.msra.mxu0 %v1495_v2 }
  0xf9   : > { %1666 = vmatmul.mubr.msk.bf16.vlgmr.msra.gmra.mrb[4].mxu0 %vm387_vm3, %v261_v3 }
 0x1c4   : > { %v897_v38 = vpop.f32.mrb[0].mxu0 }
 0x1c5   : > { %v911_v40 = vmul.f32 %v909_v37, %v897_v38  ;;  %v899_v41 = vpop.f32.mrb[1].mxu0 }
 0x1c6   : > { %v912_v42 = vmul.f32 %v909_v37, %v899_v41  ;;  %v901_v43 = vpop.f32.mrb[2].mxu0 }
 0x1c7   : > { %v917_v45 = vadd.f32 %v915_v39, %v911_v40  ;;  %v902_v46 = vpop.f32.mrb[3].mxu0 }
 0x1c8   : > { %v918_v47 = vadd.f32 %v915_v39, %v912_v42 }
 0x1c9   : > { %v919_v48 = vmax.f32 %v917_v45, 0.0 }
 0x1ca   : > { %v920_v49 = vmax.f32 %v918_v47, 0.0 }
 0x1cb   : > { %v925_v50 = vmul.f32 %v919_v48, %v1857_v17  ;;  %v921_v55 = vmul.f32 %v919_v48, %v1861_v19  ;;  %v929_v57 = vmul.f32 %v919_v48, %v1867_v22 }
 0x1cc   : > { %v926_v51 = vmul.f32 %v920_v49, %v1859_v18  ;;  %v922_v17 = vmul.f32 %v920_v49, %v1863_v20  ;;  %v930_v19 = vmul.f32 %v920_v49, %v1869_v23  ;;  %v2020_v20 = vld [vmem:[%s2126_s2 + $0x4] sm:$0xf]  ;;  %v2035_v23 = vld [vmem:[%s2126_s2 + $0x8] sm:$0xf] }
 0x1cd   : > { %v1997_v53 = vpack.c.bf16 %v925_v50, %v925_v50  ;;  %v923_v18 = vpack.c.bf16 %v921_v55, %v921_v55  ;;  %v931_v59 = vpack.c.bf16 %v929_v57, %v929_v57  ;;  %v1653_v22 = vcombine.low %v2020_v20, %v2020_v20 }
 0x1ce   : > { %v1999_v54 = vpack.c.bf16 %v926_v51, %v926_v51  ;;  %v924_v58 = vpack.c.bf16 %v922_v17, %v922_v17  ;;  %v932_v60 = vpack.c.bf16 %v930_v19, %v930_v19  ;;  %v1660_v61 = vcombine.low %v2035_v23, %v2035_v23  ;;  %v1534_v19 = vpop.f32.mrb[4].mxu0 }
 0x1cf   : > { %944 = vrot.lane.b32.xlu1 %v1997_v53, %s1783_s8  ;;  %v1192_v38 = vsel %vm969_vm10, %v1997_v53, 0 }
 0x1d0   : > { %946 = vrot.lane.b32.xlu0 %v1999_v54, %s1783_s8 }
 0x1d3   : > { %963 = vrot.lane.b32.xlu1 %v1644_v56, %s1786_s11 }
 0x1d4   : > { %935 = vrot.lane.b32.xlu0 %v923_v18, %s1784_s9 }
 0x1d7   : > { %937 = vrot.lane.b32.xlu1 %v924_v58, %s1784_s9  ;;  %s1670_s9 = sshll.u32 %s2132_s22, 4 }
 0x1d8   : > { %953 = vrot.lane.b32.xlu0 %v931_v59, %s1785_s10 }
 0x1db   : > { %955 = vrot.lane.b32.xlu1 %v932_v60, %s1785_s10 }
 0x1dc   : > { %1065 = vrot.lane.b32.xlu0 %v1644_v56, %s1790_s17 }
 0x1df   : > { %1118 = vrot.lane.b32.xlu1 %v923_v18, %s1787_s12 }
 0x1e0   : > { %1120 = vrot.lane.b32.xlu0 %v924_v58, %s1787_s12  ;;  %s251_s12 = scalar_lea.vmem %s2130_s6, %s1670_s9 }
 0x1e3   : > { %1186 = vrot.lane.b32.xlu1 %v1653_v22, %s1786_s11 }
 0x1e4   : > { %1125 = vrot.lane.b32.xlu0 %v931_v59, %s1788_s15 }
 0x1e7   : > { %1127 = vrot.lane.b32.xlu1 %v932_v60, %s1788_s15 }
 0x1e8   : > { %1240 = vrot.lane.b32.xlu0 %v1653_v22, %s1790_s17 }
 0x1eb   : > { %1293 = vrot.lane.b32.xlu1 %v923_v18, %s1789_s16 }
 0x1ec   : > { %1295 = vrot.lane.b32.xlu0 %v924_v58, %s1789_s16 }
 0x1ef   : > { %1300 = vrot.lane.b32.xlu1 %v1997_v53, %s1790_s17 }
 0x1f0   : > { %1302 = vrot.lane.b32.xlu0 %v1999_v54, %s1790_s17 }
 0x1f3   : > { %1368 = vrot.lane.b32.xlu1 %v1660_v61, %s1786_s11 }
 0x1f4   : > { %1307 = vrot.lane.b32.xlu0 %v931_v59, %s1791_s20  ;;  %v1536_v59 = vpop.f32.mrb[5].mxu0 }
 0x1f7   : > { %1309 = vrot.lane.b32.xlu1 %v932_v60, %s1791_s20  ;;  %v1538_v60 = vpop.f32.mrb[6].mxu0 }
 0x1f8   : > { %1421 = vrot.lane.b32.xlu0 %v1660_v61, %s1790_s17 }
 0x1fb   : > { %1475 = vperm.xlu1 %1761, %v1929_v44  }
 0x1fc   : > { %1542 = vperm.xlu0 %1762, %v1929_v44  }
 0x1ff   : > { %1763 = vset.pattern.permute.xlu1 %v1795_v21 }
 0x200   : > { %1765 = vset.pattern.permute.xlu0 %v1796_v1  ;;  %1481 = vperm.xlu1 %1763, %v1929_v44  }
 0x204   : > { %1764 = vset.pattern.permute.xlu1 %v1796_v1 }
 0x205   : > { %1548 = vperm.xlu1 %1764, %v1929_v44  }
 0x241   : > { %v945_v6 = vpop.permute.xlu1 %944 }
 0x242   : > { %v947_v7 = vpop.permute.xlu0 %946  ;;  %v950_v8 = vsel %vm366_vm0, 0, %v945_v6 }
 0x243   : > { %v948_v9 = vsel %vm366_vm0, %v945_v6, %v947_v7  ;;  %v970_v10 = vsel %vm969_vm10, %v950_v8, 0 }
 0x244   : > { %1645 = vmatprep.subr.msk.bf16.mxu1 %vm969_vm10, %v948_v9 }
 0x245   : > { %976 = vmatpush1.bf16.msra.mxu1 %v970_v10  ;;  %v964_v11 = vpop.permute.xlu1 %963 }
 0x246   : > { %v936_v12 = vpop.permute.xlu0 %935 }
 0x247   : > { %v941_v13 = vsel %vm354_vm1, 0, %v936_v12 }
 0x248   : > { %1646 = vmatmul.mubr.msk.bf16.vlgmr.msra.gmra.mrb[0].mxu1 %vm965_vm11, %v964_v11  ;;  %v1019_v16 = vsel %vm969_vm10, %v941_v13, 0 }
 0x249   : > { %v938_v44 = vpop.permute.xlu1 %937  ;;  %1056 = vmatprep.mubr.bf16.mxu1 %v1782_v26 }
 0x24a   : > { %v939_v14 = vsel %vm354_vm1, %v936_v12, %v938_v44  ;;  %v954_v15 = vpop.permute.xlu0 %953 }
 0x24b   : > { %1647 = vmatprep.subr.msk.bf16.mxu1 %vm969_vm10, %v939_v14  ;;  %v959_v28 = vsel %vm377_vm4, 0, %v954_v15 }
 0x24c   : > { %1025 = vmatpush1.bf16.msra.mxu1 %v1019_v16  ;;  %v1070_v32 = vsel %vm969_vm10, %v959_v28, 0 }
 0x24d   : > { %v956_v24 = vpop.permute.xlu1 %955 }
 0x24e   : > { %v957_v25 = vsel %vm377_vm4, %v954_v15, %v956_v24  ;;  %v1066_v27 = vpop.permute.xlu0 %1065 }
 0x24f   : > { %1649 = vmatprep.subr.msk.bf16.mxu1 %vm969_vm10, %v957_v25 }
 0x251   : > { %v1119_v29 = vpop.permute.xlu1 %1118 }
 0x252   : > { %v1121_v30 = vpop.permute.xlu0 %1120  ;;  %v1124_v33 = vsel %vm544_vm5, 0, %v1119_v29 }
 0x253   : > { %v1122_v31 = vsel %vm544_vm5, %v1119_v29, %v1121_v30  ;;  %v1135_v34 = vsel %vm969_vm10, %v1124_v33, 0 }
 0x254   : > { %1648 = vmatmul.mubr.msk.bf16.vlgmr.msra.gmra.mrb[0].mxu1 %vm965_vm11, %v1995_v52 }
 0x255   : > { %1076 = vmatpush1.bf16.msra.mxu1 %v1070_v32  ;;  %1107 = vmatprep.mubr.bf16.mxu1 %v1782_v26  ;;  %v1187_v35 = vpop.permute.xlu1 %1186 }
 0x256   : > { %1651 = vmatprep.subr.msk.bf16.mxu1 %vm969_vm10, %v1122_v31  ;;  %v1126_v36 = vpop.permute.xlu0 %1125 }
 0x259   : > { %v1128_v37 = vpop.permute.xlu1 %1127 }
 0x25a   : > { %v1131_v39 = vsel %vm553_vm6, %v1128_v37, 0  ;;  %v1241_v40 = vpop.permute.xlu0 %1240  ;;  %v1129_v41 = vsel %vm553_vm6, %v1126_v36, %v1128_v37 }
 0x25b   : > { %v1246_v43 = vsel %vm969_vm10, %v1129_v41, 0 }
 0x25d   : > { %v1294_v46 = vpop.permute.xlu1 %1293 }
 0x25e   : > { %v1296_v42 = vpop.permute.xlu0 %1295 }
 0x25f   : > { %v1299_v45 = vsel %vm723_vm7, %v1296_v42, 0  ;;  %v1297_v47 = vsel %vm723_vm7, %v1294_v46, %v1296_v42 }
 0x260   : > { %1650 = vmatmul.mubr.msk.bf16.vlgmr.msra.gmra.mrb[0].mxu1 %vm965_vm11, %v1066_v27  ;;  %v1318_v50 = vsel %vm969_vm10, %v1297_v47, 0 }
 0x261   : > { %1141 = vmatpush1.bf16.msra.mxu1 %v1135_v34  ;;  %1172 = vmatprep.mubr.bf16.mxu1 %v1782_v26  ;;  %v1301_v48 = vpop.permute.xlu1 %1300 }
 0x262   : > { %1654 = vmatprep.subr.msk.bf16.mxu1 %vm969_vm10, %v1999_v54  ;;  %v1303_v49 = vpop.permute.xlu0 %1302 }
 0x263   : > { %v1306_v51 = vsel %vm732_vm8, %v1303_v49, 0  ;;  %v1304_v53 = vsel %vm732_vm8, %v1301_v48, %v1303_v49 }
 0x264   : > { %v1374_v55 = vsel %vm969_vm10, %v1304_v53, 0 }
 0x265   : > { %v1369_v52 = vpop.permute.xlu1 %1368 }
 0x266   : > { %v1308_v17 = vpop.permute.xlu0 %1307 }
 0x269   : > { %v1310_v54 = vpop.permute.xlu1 %1309 }
 0x26a   : > { %v1313_v56 = vsel %vm741_vm9, %v1310_v54, 0  ;;  %v1311_v18 = vsel %vm741_vm9, %v1308_v17, %v1310_v54  ;;  %v1422_v58 = vpop.permute.xlu0 %1421 }
 0x26b   : > { %v1427_v57 = vsel %vm969_vm10, %v1311_v18, 0 }
 0x26c   : > { %1652 = vmatmul.mubr.msk.bf16.vlgmr.msra.gmra.mrb[0].mxu1 %vm965_vm11, %v2020_v20  ;;  %v1539_v20 = vpop.f32.mrb[7].mxu0 }
 0x26d   : > { %1198 = vmatpush1.bf16.msra.mxu1 %v1192_v38  ;;  %1229 = vmatprep.mubr.bf16.mxu1 %v1782_v26 }
 0x26e   : > { %1656 = vmatprep.subr.msk.bf16.mxu1 %vm969_vm10, %v1131_v39 }
 0x278   : > { %1655 = vmatmul.mubr.msk.bf16.vlgmr.msra.gmra.mrb[0].mxu1 %vm965_vm11, %v1187_v35 }
 0x279   : > { %1251 = vmatpush1.bf16.msra.mxu1 %v1246_v43  ;;  %1282 = vmatprep.mubr.bf16.mxu1 %v1782_v26 }
 0x27a   : > { %1658 = vmatprep.subr.msk.bf16.mxu1 %vm969_vm10, %v1299_v45  ;;  %v1476_v22 = vpop.permute.xlu1 %1475 }
 0x27b   : > { %v1543_v61 = vpop.permute.xlu0 %1542 }
 0x27c   : > { %v1545_v62 = vmul.f32 %v1543_v61, %v1534_v19  ;;  %v1546_v63 = vmul.f32 %v1543_v61, %v1536_v59 }
 0x284   : > { %1657 = vmatmul.mubr.msk.bf16.vlgmr.msra.gmra.mrb[0].mxu1 %vm965_vm11, %v1241_v40 }
 0x285   : > { %1323 = vmatpush1.bf16.msra.mxu1 %v1318_v50  ;;  %1354 = vmatprep.mubr.bf16.mxu1 %v1782_v26 }
 0x286   : > { %1661 = vmatprep.subr.msk.bf16.mxu1 %vm969_vm10, %v1306_v51 }
 0x290   : > { %1659 = vmatmul.mubr.msk.bf16.vlgmr.msra.gmra.mrb[0].mxu1 %vm965_vm11, %v2035_v23  ;;  %v1482_v23 = vpop.permute.xlu1 %1481 }
 0x291   : > { %1379 = vmatpush1.bf16.msra.mxu1 %v1374_v55  ;;  %1410 = vmatprep.mubr.bf16.mxu1 %v1782_v26 }
 0x292   : > { %1663 = vmatprep.subr.msk.bf16.mxu1 %vm969_vm10, %v1313_v56 }
 0x294   : > { %v1549_v0 = vpop.permute.xlu1 %1548 }
 0x295   : > { %v1551_v5 = vadd.f32 %v1549_v0, %v1545_v62 }
 0x29c   : > { %1662 = vmatmul.mubr.msk.bf16.vlgmr.msra.gmra.mrb[0].mxu1 %vm965_vm11, %v1369_v52 }
 0x29d   : > { %1432 = vmatpush1.bf16.msra.mxu1 %v1427_v57  ;;  %1463 = vmatprep.mubr.bf16.mxu1 %v1782_v26  ;;  %v1552_v26 = vadd.f32 %v1549_v0, %v1546_v63 }
 0x2a8   : > { %1664 = vmatmul.mubr.msk.bf16.vlgmr.msra.gmra.mrb[0].mxu1 %vm965_vm11, %v1422_v58 }
 0x37b   : > { %v1465_v2 = vpop.f32.mrb[0].mxu1 }
 0x37c   : > { %v1478_v3 = vmul.f32 %v1476_v22, %v1465_v2  ;;  %v1467_v4 = vpop.f32.mrb[1].mxu1 }
 0x37d   : > { %v1479_v21 = vmul.f32 %v1476_v22, %v1467_v4  ;;  %v1469_v1 = vpop.f32.mrb[2].mxu1 }
 0x37e   : > { %v1484_v6 = vadd.f32 %v1482_v23, %v1478_v3  ;;  %v1470_v7 = vpop.f32.mrb[3].mxu1 }
 0x37f   : > { %v1485_v8 = vadd.f32 %v1482_v23, %v1479_v21 }
 0x380   : > { %v1553_v9 = vadd.f32 %v1551_v5, %v1484_v6 }
 0x381   : > { %v1554_v10 = vadd.f32 %v1552_v26, %v1485_v8 }
 0x382   : > { %v1555_v11 = vmax.f32 %v1553_v9, 0.0 }
 0x383   : > { %v1556_v12 = vmax.f32 %v1554_v10, 0.0 }
 0x384   : > { %1557 = vst [vmem:[%s251_s12] sm:$0xff] %v1555_v11 }
 0x385   : > { %1558 = vst [vmem:[%s251_s12 + $0x8] sm:$0xff] %v1556_v12 }
 0x386 PF: > { %s16_s21 = sadd.s32 1, %s1779_s21  }
 0x387   : > { %p13_p4 = scmp.ge.s32.totalorder %s16_s21, 4  }
 0x389   :  { %15 = sbr.rel (!%p13_p4) target bundleno = 1 (0x1), region = 74 }

</bundles_post_ra>
